<compile_context>
chip_gen: v7x
topology: tpu7x:2x2x1
jax: 0.10.0
libtpu: 0.0.40
codegen_flags: <defaults>
</compile_context>

<pallas_src>
import functools

import jax
import jax.numpy as jnp
from jax.experimental import pallas as pl
from jax.experimental.pallas import tpu as pltpu

EPS = 1e-5  # torch.nn.GroupNorm default


# --------------------------------- kernel ---------------------------------
def conv_block_kernel(x_ref, gamma_ref, beta_ref, w_ref, b_ref, o_ref,
                      ypad_ref, xk_ref, *, num_groups, W, pad_l, n_img):
    """Fused GroupNorm -> SiLU -> 3x3 conv for `n_img` batch images per grid step.

    x_ref:     (n_img, Cin, H*W)          channels in sublanes, flat spatial in lanes
    gamma_ref: (Cin, 1), beta_ref: (Cin, 1)
    w_ref:     (Cout, 9*Cin)              tap-major / channel-minor contraction panel
    b_ref:     (Cout, 1)
    o_ref:     (n_img, Cout, H*W)         lane-dense output
    ypad_ref:  (Cin, pad_l + H*W + pad_l) VMEM staging buffer with zero halo (reused per image)
    xk_ref:    (9*Cin, n_img*H*W)         contraction operand scratch
    """
    C = x_ref.shape[1]
    HW = x_ref.shape[2]
    G = num_groups
    Cg = C // G
    n = jnp.float32(Cg * HW)
    stage_dtype = ypad_ref.dtype

    # Zero ONLY the halo regions; the center is fully overwritten per image below.
    # (Done every step: safe even if the batch axis is megacore-sharded.)
    ypad_ref[:, :pad_l] = jnp.zeros((C, pad_l), stage_dtype)
    ypad_ref[:, pad_l + HW:pad_l + HW + pad_l] = jnp.zeros((C, pad_l), stage_dtype)

    gamma = gamma_ref[...].astype(jnp.float32)                            # (C, 1)
    beta = beta_ref[...].astype(jnp.float32)                              # (C, 1)

    # W-boundary masks on the flattened spatial axis (row/halo boundary in H handled by
    # the zero halo; only the W wrap needs masking).  Shared across images.
    col = jax.lax.broadcasted_iota(jnp.int32, (1, HW), 1) % W
    mask_l = col >= 1            # tap shifted by dw = -1
    mask_r = col <= W - 2        # tap shifted by dw = +1
    zero = jnp.zeros((), stage_dtype)

    for i in range(n_img):
        # ---- pass 1: per-group statistics (single pass: sum & sum-of-squares, f32) ----
        x = x_ref[i].astype(jnp.float32)                                  # (C, HW)
        ch_sum = jnp.sum(x, axis=-1, keepdims=True)                       # (C, 1)
        ch_ssq = jnp.sum(x * x, axis=-1, keepdims=True)                   # (C, 1)
        mean_g = jnp.sum(ch_sum.reshape(G, Cg), axis=-1, keepdims=True) / n   # (G, 1)
        msq_g = jnp.sum(ch_ssq.reshape(G, Cg), axis=-1, keepdims=True) / n    # (G, 1)
        var_g = jnp.maximum(msq_g - mean_g * mean_g, 0.0)
        rstd_g = jax.lax.rsqrt(var_g + EPS)
        scale_c = jnp.broadcast_to(rstd_g, (G, Cg)).reshape(C, 1) * gamma     # (C, 1)
        shift_c = beta - jnp.broadcast_to(mean_g, (G, Cg)).reshape(C, 1) * scale_c

        # ---- pass 2: fused normalize + affine + SiLU + cast + staged store ----
        y_aff = x_ref[i].astype(jnp.float32) * scale_c + shift_c          # (C, HW)
        if stage_dtype == jnp.bfloat16:
            y_aff = y_aff.astype(jnp.bfloat16)       # bf16 VPU/EUP on v6e/v7x
        y = (y_aff * jax.nn.sigmoid(y_aff)).astype(stage_dtype)           # SiLU, matmul dtype
        ypad_ref[:, pad_l:pad_l + HW] = y                                 # aligned center store

        # ---- build the 9 taps directly into the contraction scratch (no concatenate) ----
        c0 = i * HW
        for kh in range(3):
            for kw in range(3):
                t = kh * 3 + kw
                dh, dw = kh - 1, kw - 1
                if dh == 0 and dw == 0:
                    tap = y                                               # reuse, no reload
                else:
                    start = pad_l + dh * W + dw
                    tap = ypad_ref[:, start:start + HW]                   # (C, HW)
                    if dw == -1:
                        tap = jnp.where(mask_l, tap, zero)
                    elif dw == 1:
                        tap = jnp.where(mask_r, tap, zero)
                xk_ref[t * C:(t + 1) * C, c0:c0 + HW] = tap

    # ---- single MXU contraction covering all images of this step + bias ----
    acc = jnp.dot(w_ref[...], xk_ref[...], preferred_element_type=jnp.float32)  # (Cout, n_img*HW)
    acc = acc + b_ref[...].astype(jnp.float32)                            # (Cout, 1) broadcast
    for i in range(n_img):
        o_ref[i] = acc[:, i * HW:(i + 1) * HW].astype(o_ref.dtype)


# ------------------------------ host wrappers ------------------------------
def pack_conv_block_params(gamma, beta, w_oihw, bias):
    """Repack parameters ONCE (call at module init, not per forward).

    Returns (gamma(C,1), beta(C,1), w2(Cout, 9*Cin) tap-major/channel-minor, bias(Cout,1)).
    """
    Cout, Cin, KH, KW = w_oihw.shape
    assert (KH, KW) == (3, 3), w_oihw.shape
    w2 = jnp.transpose(w_oihw, (0, 2, 3, 1)).reshape(Cout, KH * KW * Cin)
    return (gamma.reshape(Cin, 1), beta.reshape(Cin, 1), w2, bias.reshape(Cout, 1))


def _vmem_estimate(n_img, C, Cout, HW, pad_l, x_bytes, w_bytes, out_bytes):
    xk = 9 * C * n_img * HW * w_bytes
    ypad = C * (2 * pad_l + HW) * w_bytes
    x_blk = 2 * n_img * C * HW * x_bytes            # double-buffered input block
    o_blk = 2 * n_img * Cout * HW * out_bytes       # double-buffered output block
    w_blk = Cout * 9 * C * w_bytes
    f32_tmp = 2 * C * HW * 4                        # transient elementwise headroom
    acc = Cout * n_img * HW * 4
    return xk + ypad + x_blk + o_blk + w_blk + f32_tmp + acc


def _pick_images_per_step(N, C, Cout, HW, pad_l, x_bytes, w_bytes):
    budget = 24 * 1024 * 1024                       # stay under the 32 MiB default scoped VMEM
    best = 1
    for d in range(1, min(N, 8) + 1):
        if N % d != 0:
            continue
        if _vmem_estimate(d, C, Cout, HW, pad_l, x_bytes, w_bytes, x_bytes) <= budget:
            best = d
    return best


def conv_block_2d(x_nchw, packed_params, *, num_groups=8, images_per_step=None):
    gamma, beta, w2, bias = packed_params
    N, C, H, W = x_nchw.shape
    Cout = w2.shape[0]
    assert w2.shape[1] == 9 * C, (w2.shape, C)
    assert C % num_groups == 0, (C, num_groups)
    HW = H * W

    x_flat = x_nchw.reshape(N, C, HW)               # layout-only view in HBM

    halo = W + 1                                    # max |tap offset| on the flat axis
    pad_l = ((halo + 127) // 128) * 128             # 128-aligned center store

    x_bytes = jnp.dtype(x_nchw.dtype).itemsize
    w_bytes = jnp.dtype(w2.dtype).itemsize

    if images_per_step is None:
        images_per_step = _pick_images_per_step(N, C, Cout, HW, pad_l, x_bytes, w_bytes)
    n_img = images_per_step
    assert N % n_img == 0, (N, n_img)

    est = _vmem_estimate(n_img, C, Cout, HW, pad_l, x_bytes, w_bytes, x_bytes)
    compiler_kwargs = dict(dimension_semantics=("parallel",))
    if est > 32 * 1024 * 1024:                      # only raise when the default would OOM
        compiler_kwargs["vmem_limit_bytes"] = int(est * 1.25)

    kernel = functools.partial(conv_block_kernel, num_groups=num_groups, W=W,
                               pad_l=pad_l, n_img=n_img)

    out_flat = pl.pallas_call(
        kernel,
        out_shape=jax.ShapeDtypeStruct((N, Cout, HW), x_nchw.dtype),
        grid=(N // n_img,),
        in_specs=[
            pl.BlockSpec((n_img, C, HW), lambda n: (n, 0, 0)),
            pl.BlockSpec((C, 1), lambda n: (0, 0)),
            pl.BlockSpec((C, 1), lambda n: (0, 0)),
            pl.BlockSpec((Cout, 9 * C), lambda n: (0, 0)),
            pl.BlockSpec((Cout, 1), lambda n: (0, 0)),
        ],
        out_specs=pl.BlockSpec((n_img, Cout, HW), lambda n: (n, 0, 0)),
        scratch_shapes=[
            pltpu.VMEM((C, pad_l + HW + pad_l), w2.dtype),    # zero-haloed staging buffer
            pltpu.VMEM((9 * C, n_img * HW), w2.dtype),        # contraction operand
        ],
        compiler_params=pltpu.CompilerParams(**compiler_kwargs),
    )(x_flat, gamma, beta, w2, bias)

    return out_flat.reshape(N, Cout, H, W)


# ------------------------------- pure-JAX reference ---------------------------------
def ref_forward(x, gamma, beta, w, b, num_groups):
    N, C, H, W = x.shape
    xr = x.reshape(N, num_groups, -1)
    mean = xr.mean(-1, keepdims=True)
    var = xr.var(-1, keepdims=True)
    xn = ((xr - mean) / jnp.sqrt(var + EPS)).reshape(N, C, H, W)
    xn = xn * gamma[None, :, None, None] + beta[None, :, None, None]
    y = xn * jax.nn.sigmoid(xn)
    out = jax.lax.conv_general_dilated(
        y, w, window_strides=(1, 1), padding=((1, 1), (1, 1)),
        dimension_numbers=("NCHW", "OIHW", "NCHW"))
    return out + b[None, :, None, None]


if __name__ == "__main__":
    # Small shapes consistent with the module (in_channels divisible by num_groups=8).
    N, Cin, Cout, H, W = 2, 8, 16, 16, 16
    num_groups = 8

    key = jax.random.PRNGKey(0)
    kx, kw, kb, kg, kbt = jax.random.split(key, 5)
    x = jax.random.normal(kx, (N, Cin, H, W), dtype=jnp.float32)
    gamma = 1.0 + 0.1 * jax.random.normal(kg, (Cin,), dtype=jnp.float32)
    beta = 0.1 * jax.random.normal(kbt, (Cin,), dtype=jnp.float32)
    w = 0.1 * jax.random.normal(kw, (Cout, Cin, 3, 3), dtype=jnp.float32)
    b = 0.1 * jax.random.normal(kb, (Cout,), dtype=jnp.float32)

    params = pack_conv_block_params(gamma, beta, w, b)   # one-time repack (hoisted)
    out = conv_block_2d(x, params, num_groups=num_groups)
    out = jax.block_until_ready(out)

    ref = ref_forward(x, gamma, beta, w, b, num_groups)
    assert out.shape == (N, Cout, H, W), out.shape
    max_err = float(jnp.max(jnp.abs(out - ref)))
    assert jnp.allclose(out, ref, rtol=1e-3, atol=1e-3), max_err

    print("KERNEL_OK")
</pallas_src>

<mosaic_0001>
module attributes {stable_mosaic.version = 11 : i64} {
  func.func @conv_block_kernel(%arg0: i32, %arg1: memref<2x8x256xf32, #tpu.memory_space<vmem>>, %arg2: memref<8x1xf32, #tpu.memory_space<vmem>>, %arg3: memref<8x1xf32, #tpu.memory_space<vmem>>, %arg4: memref<16x72xf32, #tpu.memory_space<vmem>>, %arg5: memref<16x1xf32, #tpu.memory_space<vmem>>, %arg6: memref<2x16x256xf32, #tpu.memory_space<vmem>>, %arg7: memref<8x512xf32, #tpu.memory_space<vmem>>, %arg8: memref<72x512xf32, #tpu.memory_space<vmem>>) attributes {dimension_semantics = [#tpu.dimension_semantics<parallel>], iteration_bounds = array<i64: 1>, scalar_prefetch = 0 : i64, scratch_operands = 2 : i64, tpu.core_type = #tpu.core_type<tc>, window_params = [{transform_indices = @transform_0, window_bounds = array<i64: 2, 8, 256>}, {pipeline_mode = #tpu.pipeline_mode<synchronous>, transform_indices = @transform_1, window_bounds = array<i64: 8, 1>}, {pipeline_mode = #tpu.pipeline_mode<synchronous>, transform_indices = @transform_2, window_bounds = array<i64: 8, 1>}, {pipeline_mode = #tpu.pipeline_mode<synchronous>, transform_indices = @transform_3, window_bounds = array<i64: 16, 72>}, {pipeline_mode = #tpu.pipeline_mode<synchronous>, transform_indices = @transform_4, window_bounds = array<i64: 16, 1>}, {transform_indices = @transform_5, window_bounds = array<i64: 2, 16, 256>}]} {
    %cst = arith.constant 0.000000e+00 : f32
    %0 = vector.broadcast %cst : f32 to vector<8x128xf32>
    %c0 = arith.constant 0 : index
    %c0_0 = arith.constant 0 : index
    %1 = vector.load %arg7[%c0, %c0_0] : memref<8x512xf32, #tpu.memory_space<vmem>>, vector<8x128xf32>
    tpu.vector_store %arg7[%c0, %c0_0], %0 {strides = array<i32>} : memref<8x512xf32, #tpu.memory_space<vmem>>, vector<8x128xf32>,
    %cst_1 = arith.constant 0.000000e+00 : f32
    %2 = vector.broadcast %cst_1 : f32 to vector<8x128xf32>
    %c0_2 = arith.constant 0 : index
    %c384 = arith.constant 384 : index
    %3 = vector.load %arg7[%c0_2, %c384] : memref<8x512xf32, #tpu.memory_space<vmem>>, vector<8x128xf32>
    tpu.vector_store %arg7[%c0_2, %c384], %2 {strides = array<i32>} : memref<8x512xf32, #tpu.memory_space<vmem>>, vector<8x128xf32>,
    %c0_3 = arith.constant 0 : index
    %c0_4 = arith.constant 0 : index
    %4 = vector.load %arg2[%c0_3, %c0_4] : memref<8x1xf32, #tpu.memory_space<vmem>>, vector<8x1xf32>
    %c0_5 = arith.constant 0 : index
    %c0_6 = arith.constant 0 : index
    %5 = vector.load %arg3[%c0_5, %c0_6] : memref<8x1xf32, #tpu.memory_space<vmem>>, vector<8x1xf32>
    %6 = tpu.iota {dimensions = array<i32: 1>} : vector<1x256xi32>
    %c16_i32 = arith.constant 16 : i32
    %c0_i32 = arith.constant 0 : i32
    %7 = arith.cmpi eq, %c16_i32, %c0_i32 : i32
    %c1_i32 = arith.constant 1 : i32
    %8 = arith.select %7, %c1_i32, %c16_i32 : i32
    %9 = vector.broadcast %8 : i32 to vector<1x256xi32>
    %10 = arith.remsi %6, %9 : vector<1x256xi32>
    %c0_i32_7 = arith.constant 0 : i32
    %11 = vector.broadcast %c0_i32_7 : i32 to vector<1x256xi32>
    %12 = arith.cmpi ne, %10, %11 : vector<1x256xi32>
    %c0_i32_8 = arith.constant 0 : i32
    %13 = vector.broadcast %c0_i32_8 : i32 to vector<1x256xi32>
    %14 = arith.cmpi slt, %10, %13 : vector<1x256xi32>
    %c0_i32_9 = arith.constant 0 : i32
    %15 = arith.cmpi slt, %8, %c0_i32_9 : i32
    %16 = vector.broadcast %15 : i1 to vector<1x256xi1>
    %17 = vector.broadcast %16 : vector<1x256xi1> to vector<1x256xi1>
    %18 = arith.xori %14, %17 : vector<1x256xi1>
    %19 = arith.andi %18, %12 : vector<1x256xi1>
    %20 = vector.broadcast %8 : i32 to vector<1x256xi32>
    %21 = arith.addi %10, %20 : vector<1x256xi32>
    %22 = arith.select %19, %21, %10 : vector<1x256xi1>, vector<1x256xi32>
    %c1_i32_10 = arith.constant 1 : i32
    %23 = vector.broadcast %c1_i32_10 : i32 to vector<1x256xi32>
    %24 = arith.cmpi sge, %22, %23 : vector<1x256xi32>
    %c14_i32 = arith.constant 14 : i32
    %25 = vector.broadcast %c14_i32 : i32 to vector<1x256xi32>
    %26 = arith.cmpi sle, %22, %25 : vector<1x256xi32>
    %c0_11 = arith.constant 0 : index
    %c0_12 = arith.constant 0 : index
    %c0_13 = arith.constant 0 : index
    %27 = vector.load %arg1[%c0_11, %c0_12, %c0_13] : memref<2x8x256xf32, #tpu.memory_space<vmem>>, vector<1x8x256xf32>
    %28 = vector.shape_cast %27 : vector<1x8x256xf32> to vector<8x256xf32>
    %cst_14 = arith.constant dense<0.000000e+00> : vector<8xf32>
    %29 = vector.multi_reduction <add>, %28, %cst_14 [1] : vector<8x256xf32> to vector<8xf32>
    %30 = vector.shape_cast %29 : vector<8xf32> to vector<8x1xf32>
    %31 = arith.mulf %28, %28 : vector<8x256xf32>
    %cst_15 = arith.constant dense<0.000000e+00> : vector<8xf32>
    %32 = vector.multi_reduction <add>, %31, %cst_15 [1] : vector<8x256xf32> to vector<8xf32>
    %33 = vector.shape_cast %32 : vector<8xf32> to vector<8x1xf32>
    %cst_16 = arith.constant dense<0.000000e+00> : vector<8xf32>
    %34 = vector.multi_reduction <add>, %30, %cst_16 [1] : vector<8x1xf32> to vector<8xf32>
    %35 = vector.shape_cast %34 : vector<8xf32> to vector<8x1xf32>
    %cst_17 = arith.constant 2.560000e+02 : f32
    %36 = vector.broadcast %cst_17 : f32 to vector<8x1xf32>
    %37 = arith.divf %35, %36 : vector<8x1xf32>
    %cst_18 = arith.constant dense<0.000000e+00> : vector<8xf32>
    %38 = vector.multi_reduction <add>, %33, %cst_18 [1] : vector<8x1xf32> to vector<8xf32>
    %39 = vector.shape_cast %38 : vector<8xf32> to vector<8x1xf32>
    %cst_19 = arith.constant 2.560000e+02 : f32
    %40 = vector.broadcast %cst_19 : f32 to vector<8x1xf32>
    %41 = arith.divf %39, %40 : vector<8x1xf32>
    %42 = arith.mulf %37, %37 : vector<8x1xf32>
    %43 = arith.subf %41, %42 : vector<8x1xf32>
    %cst_20 = arith.constant 0.000000e+00 : f32
    %44 = vector.broadcast %cst_20 : f32 to vector<8x1xf32>
    %45 = arith.maximumf %43, %44 : vector<8x1xf32>
    %cst_21 = arith.constant 9.99999974E-6 : f32
    %46 = vector.broadcast %cst_21 : f32 to vector<8x1xf32>
    %47 = arith.addf %45, %46 : vector<8x1xf32>
    %48 = math.rsqrt %47 : vector<8x1xf32>
    %49 = arith.mulf %48, %4 : vector<8x1xf32>
    %50 = arith.mulf %37, %49 : vector<8x1xf32>
    %51 = arith.subf %5, %50 : vector<8x1xf32>
    %c0_22 = arith.constant 0 : index
    %c0_23 = arith.constant 0 : index
    %c0_24 = arith.constant 0 : index
    %52 = vector.load %arg1[%c0_22, %c0_23, %c0_24] : memref<2x8x256xf32, #tpu.memory_space<vmem>>, vector<1x8x256xf32>
    %53 = vector.shape_cast %52 : vector<1x8x256xf32> to vector<8x256xf32>
    %54 = vector.broadcast %49 : vector<8x1xf32> to vector<8x256xf32>
    %55 = arith.mulf %53, %54 : vector<8x256xf32>
    %56 = vector.broadcast %51 : vector<8x1xf32> to vector<8x256xf32>
    %57 = arith.addf %55, %56 : vector<8x256xf32>
    %58 = arith.negf %57 : vector<8x256xf32>
    %59 = math.exp %58 : vector<8x256xf32>
    %cst_25 = arith.constant 1.000000e+00 : f32
    %60 = vector.broadcast %cst_25 : f32 to vector<8x256xf32>
    %61 = arith.addf %60, %59 : vector<8x256xf32>
    %62 = arith.divf %60, %61 : vector<8x256xf32>
    %63 = arith.mulf %57, %62 : vector<8x256xf32>
    %c0_26 = arith.constant 0 : index
    %c128 = arith.constant 128 : index
    %64 = vector.load %arg7[%c0_26, %c128] : memref<8x512xf32, #tpu.memory_space<vmem>>, vector<8x256xf32>
    tpu.vector_store %arg7[%c0_26, %c128], %63 {strides = array<i32>} : memref<8x512xf32, #tpu.memory_space<vmem>>, vector<8x256xf32>,
    %c0_27 = arith.constant 0 : index
    %c111 = arith.constant 111 : index
    %65 = vector.load %arg7[%c0_27, %c111] : memref<8x512xf32, #tpu.memory_space<vmem>>, vector<8x256xf32>
    %cst_28 = arith.constant 0.000000e+00 : f32
    %66 = vector.shape_cast %24 : vector<1x256xi1> to vector<1x256xi1>
    %67 = vector.broadcast %66 : vector<1x256xi1> to vector<8x256xi1>
    %68 = vector.broadcast %cst_28 : f32 to vector<8x256xf32>
    %69 = arith.select %67, %65, %68 : vector<8x256xi1>, vector<8x256xf32>
    %c0_29 = arith.constant 0 : index
    %c0_30 = arith.constant 0 : index
    %70 = vector.load %arg8[%c0_29, %c0_30] : memref<72x512xf32, #tpu.memory_space<vmem>>, vector<8x256xf32>
    tpu.vector_store %arg8[%c0_29, %c0_30], %69 {strides = array<i32>} : memref<72x512xf32, #tpu.memory_space<vmem>>, vector<8x256xf32>,
    %c0_31 = arith.constant 0 : index
    %c112 = arith.constant 112 : index
    %71 = vector.load %arg7[%c0_31, %c112] : memref<8x512xf32, #tpu.memory_space<vmem>>, vector<8x256xf32>
    %c8 = arith.constant 8 : index
    %c0_32 = arith.constant 0 : index
    %72 = vector.load %arg8[%c8, %c0_32] : memref<72x512xf32, #tpu.memory_space<vmem>>, vector<8x256xf32>
    tpu.vector_store %arg8[%c8, %c0_32], %71 {strides = array<i32>} : memref<72x512xf32, #tpu.memory_space<vmem>>, vector<8x256xf32>,
    %c0_33 = arith.constant 0 : index
    %c113 = arith.constant 113 : index
    %73 = vector.load %arg7[%c0_33, %c113] : memref<8x512xf32, #tpu.memory_space<vmem>>, vector<8x256xf32>
    %cst_34 = arith.constant 0.000000e+00 : f32
    %74 = vector.shape_cast %26 : vector<1x256xi1> to vector<1x256xi1>
    %75 = vector.broadcast %74 : vector<1x256xi1> to vector<8x256xi1>
    %76 = vector.broadcast %cst_34 : f32 to vector<8x256xf32>
    %77 = arith.select %75, %73, %76 : vector<8x256xi1>, vector<8x256xf32>
    %c16 = arith.constant 16 : index
    %c0_35 = arith.constant 0 : index
    %78 = vector.load %arg8[%c16, %c0_35] : memref<72x512xf32, #tpu.memory_space<vmem>>, vector<8x256xf32>
    tpu.vector_store %arg8[%c16, %c0_35], %77 {strides = array<i32>} : memref<72x512xf32, #tpu.memory_space<vmem>>, vector<8x256xf32>,
    %c0_36 = arith.constant 0 : index
    %c127 = arith.constant 127 : index
    %79 = vector.load %arg7[%c0_36, %c127] : memref<8x512xf32, #tpu.memory_space<vmem>>, vector<8x256xf32>
    %cst_37 = arith.constant 0.000000e+00 : f32
    %80 = vector.shape_cast %24 : vector<1x256xi1> to vector<1x256xi1>
    %81 = vector.broadcast %80 : vector<1x256xi1> to vector<8x256xi1>
    %82 = vector.broadcast %cst_37 : f32 to vector<8x256xf32>
    %83 = arith.select %81, %79, %82 : vector<8x256xi1>, vector<8x256xf32>
    %c24 = arith.constant 24 : index
    %c0_38 = arith.constant 0 : index
    %84 = vector.load %arg8[%c24, %c0_38] : memref<72x512xf32, #tpu.memory_space<vmem>>, vector<8x256xf32>
    tpu.vector_store %arg8[%c24, %c0_38], %83 {strides = array<i32>} : memref<72x512xf32, #tpu.memory_space<vmem>>, vector<8x256xf32>,
    %c32 = arith.constant 32 : index
    %c0_39 = arith.constant 0 : index
    %85 = vector.load %arg8[%c32, %c0_39] : memref<72x512xf32, #tpu.memory_space<vmem>>, vector<8x256xf32>
    tpu.vector_store %arg8[%c32, %c0_39], %63 {strides = array<i32>} : memref<72x512xf32, #tpu.memory_space<vmem>>, vector<8x256xf32>,
    %c0_40 = arith.constant 0 : index
    %c129 = arith.constant 129 : index
    %86 = vector.load %arg7[%c0_40, %c129] : memref<8x512xf32, #tpu.memory_space<vmem>>, vector<8x256xf32>
    %cst_41 = arith.constant 0.000000e+00 : f32
    %87 = vector.shape_cast %26 : vector<1x256xi1> to vector<1x256xi1>
    %88 = vector.broadcast %87 : vector<1x256xi1> to vector<8x256xi1>
    %89 = vector.broadcast %cst_41 : f32 to vector<8x256xf32>
    %90 = arith.select %88, %86, %89 : vector<8x256xi1>, vector<8x256xf32>
    %c40 = arith.constant 40 : index
    %c0_42 = arith.constant 0 : index
    %91 = vector.load %arg8[%c40, %c0_42] : memref<72x512xf32, #tpu.memory_space<vmem>>, vector<8x256xf32>
    tpu.vector_store %arg8[%c40, %c0_42], %90 {strides = array<i32>} : memref<72x512xf32, #tpu.memory_space<vmem>>, vector<8x256xf32>,
    %c0_43 = arith.constant 0 : index
    %c143 = arith.constant 143 : index
    %92 = vector.load %arg7[%c0_43, %c143] : memref<8x512xf32, #tpu.memory_space<vmem>>, vector<8x256xf32>
    %cst_44 = arith.constant 0.000000e+00 : f32
    %93 = vector.shape_cast %24 : vector<1x256xi1> to vector<1x256xi1>
    %94 = vector.broadcast %93 : vector<1x256xi1> to vector<8x256xi1>
    %95 = vector.broadcast %cst_44 : f32 to vector<8x256xf32>
    %96 = arith.select %94, %92, %95 : vector<8x256xi1>, vector<8x256xf32>
    %c48 = arith.constant 48 : index
    %c0_45 = arith.constant 0 : index
    %97 = vector.load %arg8[%c48, %c0_45] : memref<72x512xf32, #tpu.memory_space<vmem>>, vector<8x256xf32>
    tpu.vector_store %arg8[%c48, %c0_45], %96 {strides = array<i32>} : memref<72x512xf32, #tpu.memory_space<vmem>>, vector<8x256xf32>,
    %c0_46 = arith.constant 0 : index
    %c144 = arith.constant 144 : index
    %98 = vector.load %arg7[%c0_46, %c144] : memref<8x512xf32, #tpu.memory_space<vmem>>, vector<8x256xf32>
    %c56 = arith.constant 56 : index
    %c0_47 = arith.constant 0 : index
    %99 = vector.load %arg8[%c56, %c0_47] : memref<72x512xf32, #tpu.memory_space<vmem>>, vector<8x256xf32>
    tpu.vector_store %arg8[%c56, %c0_47], %98 {strides = array<i32>} : memref<72x512xf32, #tpu.memory_space<vmem>>, vector<8x256xf32>,
    %c0_48 = arith.constant 0 : index
    %c145 = arith.constant 145 : index
    %100 = vector.load %arg7[%c0_48, %c145] : memref<8x512xf32, #tpu.memory_space<vmem>>, vector<8x256xf32>
    %cst_49 = arith.constant 0.000000e+00 : f32
    %101 = vector.shape_cast %26 : vector<1x256xi1> to vector<1x256xi1>
    %102 = vector.broadcast %101 : vector<1x256xi1> to vector<8x256xi1>
    %103 = vector.broadcast %cst_49 : f32 to vector<8x256xf32>
    %104 = arith.select %102, %100, %103 : vector<8x256xi1>, vector<8x256xf32>
    %c64 = arith.constant 64 : index
    %c0_50 = arith.constant 0 : index
    %105 = vector.load %arg8[%c64, %c0_50] : memref<72x512xf32, #tpu.memory_space<vmem>>, vector<8x256xf32>
    tpu.vector_store %arg8[%c64, %c0_50], %104 {strides = array<i32>} : memref<72x512xf32, #tpu.memory_space<vmem>>, vector<8x256xf32>,
    %c1 = arith.constant 1 : index
    %c0_51 = arith.constant 0 : index
    %c0_52 = arith.constant 0 : index
    %106 = vector.load %arg1[%c1, %c0_51, %c0_52] : memref<2x8x256xf32, #tpu.memory_space<vmem>>, vector<1x8x256xf32>
    %107 = vector.shape_cast %106 : vector<1x8x256xf32> to vector<8x256xf32>
    %cst_53 = arith.constant dense<0.000000e+00> : vector<8xf32>
    %108 = vector.multi_reduction <add>, %107, %cst_53 [1] : vector<8x256xf32> to vector<8xf32>
    %109 = vector.shape_cast %108 : vector<8xf32> to vector<8x1xf32>
    %110 = arith.mulf %107, %107 : vector<8x256xf32>
    %cst_54 = arith.constant dense<0.000000e+00> : vector<8xf32>
    %111 = vector.multi_reduction <add>, %110, %cst_54 [1] : vector<8x256xf32> to vector<8xf32>
    %112 = vector.shape_cast %111 : vector<8xf32> to vector<8x1xf32>
    %cst_55 = arith.constant dense<0.000000e+00> : vector<8xf32>
    %113 = vector.multi_reduction <add>, %109, %cst_55 [1] : vector<8x1xf32> to vector<8xf32>
    %114 = vector.shape_cast %113 : vector<8xf32> to vector<8x1xf32>
    %cst_56 = arith.constant 2.560000e+02 : f32
    %115 = vector.broadcast %cst_56 : f32 to vector<8x1xf32>
    %116 = arith.divf %114, %115 : vector<8x1xf32>
    %cst_57 = arith.constant dense<0.000000e+00> : vector<8xf32>
    %117 = vector.multi_reduction <add>, %112, %cst_57 [1] : vector<8x1xf32> to vector<8xf32>
    %118 = vector.shape_cast %117 : vector<8xf32> to vector<8x1xf32>
    %cst_58 = arith.constant 2.560000e+02 : f32
    %119 = vector.broadcast %cst_58 : f32 to vector<8x1xf32>
    %120 = arith.divf %118, %119 : vector<8x1xf32>
    %121 = arith.mulf %116, %116 : vector<8x1xf32>
    %122 = arith.subf %120, %121 : vector<8x1xf32>
    %cst_59 = arith.constant 0.000000e+00 : f32
    %123 = vector.broadcast %cst_59 : f32 to vector<8x1xf32>
    %124 = arith.maximumf %122, %123 : vector<8x1xf32>
    %cst_60 = arith.constant 9.99999974E-6 : f32
    %125 = vector.broadcast %cst_60 : f32 to vector<8x1xf32>
    %126 = arith.addf %124, %125 : vector<8x1xf32>
    %127 = math.rsqrt %126 : vector<8x1xf32>
    %128 = arith.mulf %127, %4 : vector<8x1xf32>
    %129 = arith.mulf %116, %128 : vector<8x1xf32>
    %130 = arith.subf %5, %129 : vector<8x1xf32>
    %c1_61 = arith.constant 1 : index
    %c0_62 = arith.constant 0 : index
    %c0_63 = arith.constant 0 : index
    %131 = vector.load %arg1[%c1_61, %c0_62, %c0_63] : memref<2x8x256xf32, #tpu.memory_space<vmem>>, vector<1x8x256xf32>
    %132 = vector.shape_cast %131 : vector<1x8x256xf32> to vector<8x256xf32>
    %133 = vector.broadcast %128 : vector<8x1xf32> to vector<8x256xf32>
    %134 = arith.mulf %132, %133 : vector<8x256xf32>
    %135 = vector.broadcast %130 : vector<8x1xf32> to vector<8x256xf32>
    %136 = arith.addf %134, %135 : vector<8x256xf32>
    %137 = arith.negf %136 : vector<8x256xf32>
    %138 = math.exp %137 : vector<8x256xf32>
    %cst_64 = arith.constant 1.000000e+00 : f32
    %139 = vector.broadcast %cst_64 : f32 to vector<8x256xf32>
    %140 = arith.addf %139, %138 : vector<8x256xf32>
    %141 = arith.divf %139, %140 : vector<8x256xf32>
    %142 = arith.mulf %136, %141 : vector<8x256xf32>
    %c0_65 = arith.constant 0 : index
    %c128_66 = arith.constant 128 : index
    %143 = vector.load %arg7[%c0_65, %c128_66] : memref<8x512xf32, #tpu.memory_space<vmem>>, vector<8x256xf32>
    tpu.vector_store %arg7[%c0_65, %c128_66], %142 {strides = array<i32>} : memref<8x512xf32, #tpu.memory_space<vmem>>, vector<8x256xf32>,
    %c0_67 = arith.constant 0 : index
    %c111_68 = arith.constant 111 : index
    %144 = vector.load %arg7[%c0_67, %c111_68] : memref<8x512xf32, #tpu.memory_space<vmem>>, vector<8x256xf32>
    %cst_69 = arith.constant 0.000000e+00 : f32
    %145 = vector.shape_cast %24 : vector<1x256xi1> to vector<1x256xi1>
    %146 = vector.broadcast %145 : vector<1x256xi1> to vector<8x256xi1>
    %147 = vector.broadcast %cst_69 : f32 to vector<8x256xf32>
    %148 = arith.select %146, %144, %147 : vector<8x256xi1>, vector<8x256xf32>
    %c0_70 = arith.constant 0 : index
    %c256 = arith.constant 256 : index
    %149 = vector.load %arg8[%c0_70, %c256] : memref<72x512xf32, #tpu.memory_space<vmem>>, vector<8x256xf32>
    tpu.vector_store %arg8[%c0_70, %c256], %148 {strides = array<i32>} : memref<72x512xf32, #tpu.memory_space<vmem>>, vector<8x256xf32>,
    %c0_71 = arith.constant 0 : index
    %c112_72 = arith.constant 112 : index
    %150 = vector.load %arg7[%c0_71, %c112_72] : memref<8x512xf32, #tpu.memory_space<vmem>>, vector<8x256xf32>
    %c8_73 = arith.constant 8 : index
    %c256_74 = arith.constant 256 : index
    %151 = vector.load %arg8[%c8_73, %c256_74] : memref<72x512xf32, #tpu.memory_space<vmem>>, vector<8x256xf32>
    tpu.vector_store %arg8[%c8_73, %c256_74], %150 {strides = array<i32>} : memref<72x512xf32, #tpu.memory_space<vmem>>, vector<8x256xf32>,
    %c0_75 = arith.constant 0 : index
    %c113_76 = arith.constant 113 : index
    %152 = vector.load %arg7[%c0_75, %c113_76] : memref<8x512xf32, #tpu.memory_space<vmem>>, vector<8x256xf32>
    %cst_77 = arith.constant 0.000000e+00 : f32
    %153 = vector.shape_cast %26 : vector<1x256xi1> to vector<1x256xi1>
    %154 = vector.broadcast %153 : vector<1x256xi1> to vector<8x256xi1>
    %155 = vector.broadcast %cst_77 : f32 to vector<8x256xf32>
    %156 = arith.select %154, %152, %155 : vector<8x256xi1>, vector<8x256xf32>
    %c16_78 = arith.constant 16 : index
    %c256_79 = arith.constant 256 : index
    %157 = vector.load %arg8[%c16_78, %c256_79] : memref<72x512xf32, #tpu.memory_space<vmem>>, vector<8x256xf32>
    tpu.vector_store %arg8[%c16_78, %c256_79], %156 {strides = array<i32>} : memref<72x512xf32, #tpu.memory_space<vmem>>, vector<8x256xf32>,
    %c0_80 = arith.constant 0 : index
    %c127_81 = arith.constant 127 : index
    %158 = vector.load %arg7[%c0_80, %c127_81] : memref<8x512xf32, #tpu.memory_space<vmem>>, vector<8x256xf32>
    %cst_82 = arith.constant 0.000000e+00 : f32
    %159 = vector.shape_cast %24 : vector<1x256xi1> to vector<1x256xi1>
    %160 = vector.broadcast %159 : vector<1x256xi1> to vector<8x256xi1>
    %161 = vector.broadcast %cst_82 : f32 to vector<8x256xf32>
    %162 = arith.select %160, %158, %161 : vector<8x256xi1>, vector<8x256xf32>
    %c24_83 = arith.constant 24 : index
    %c256_84 = arith.constant 256 : index
    %163 = vector.load %arg8[%c24_83, %c256_84] : memref<72x512xf32, #tpu.memory_space<vmem>>, vector<8x256xf32>
    tpu.vector_store %arg8[%c24_83, %c256_84], %162 {strides = array<i32>} : memref<72x512xf32, #tpu.memory_space<vmem>>, vector<8x256xf32>,
    %c32_85 = arith.constant 32 : index
    %c256_86 = arith.constant 256 : index
    %164 = vector.load %arg8[%c32_85, %c256_86] : memref<72x512xf32, #tpu.memory_space<vmem>>, vector<8x256xf32>
    tpu.vector_store %arg8[%c32_85, %c256_86], %142 {strides = array<i32>} : memref<72x512xf32, #tpu.memory_space<vmem>>, vector<8x256xf32>,
    %c0_87 = arith.constant 0 : index
    %c129_88 = arith.constant 129 : index
    %165 = vector.load %arg7[%c0_87, %c129_88] : memref<8x512xf32, #tpu.memory_space<vmem>>, vector<8x256xf32>
    %cst_89 = arith.constant 0.000000e+00 : f32
    %166 = vector.shape_cast %26 : vector<1x256xi1> to vector<1x256xi1>
    %167 = vector.broadcast %166 : vector<1x256xi1> to vector<8x256xi1>
    %168 = vector.broadcast %cst_89 : f32 to vector<8x256xf32>
    %169 = arith.select %167, %165, %168 : vector<8x256xi1>, vector<8x256xf32>
    %c40_90 = arith.constant 40 : index
    %c256_91 = arith.constant 256 : index
    %170 = vector.load %arg8[%c40_90, %c256_91] : memref<72x512xf32, #tpu.memory_space<vmem>>, vector<8x256xf32>
    tpu.vector_store %arg8[%c40_90, %c256_91], %169 {strides = array<i32>} : memref<72x512xf32, #tpu.memory_space<vmem>>, vector<8x256xf32>,
    %c0_92 = arith.constant 0 : index
    %c143_93 = arith.constant 143 : index
    %171 = vector.load %arg7[%c0_92, %c143_93] : memref<8x512xf32, #tpu.memory_space<vmem>>, vector<8x256xf32>
    %cst_94 = arith.constant 0.000000e+00 : f32
    %172 = vector.shape_cast %24 : vector<1x256xi1> to vector<1x256xi1>
    %173 = vector.broadcast %172 : vector<1x256xi1> to vector<8x256xi1>
    %174 = vector.broadcast %cst_94 : f32 to vector<8x256xf32>
    %175 = arith.select %173, %171, %174 : vector<8x256xi1>, vector<8x256xf32>
    %c48_95 = arith.constant 48 : index
    %c256_96 = arith.constant 256 : index
    %176 = vector.load %arg8[%c48_95, %c256_96] : memref<72x512xf32, #tpu.memory_space<vmem>>, vector<8x256xf32>
    tpu.vector_store %arg8[%c48_95, %c256_96], %175 {strides = array<i32>} : memref<72x512xf32, #tpu.memory_space<vmem>>, vector<8x256xf32>,
    %c0_97 = arith.constant 0 : index
    %c144_98 = arith.constant 144 : index
    %177 = vector.load %arg7[%c0_97, %c144_98] : memref<8x512xf32, #tpu.memory_space<vmem>>, vector<8x256xf32>
    %c56_99 = arith.constant 56 : index
    %c256_100 = arith.constant 256 : index
    %178 = vector.load %arg8[%c56_99, %c256_100] : memref<72x512xf32, #tpu.memory_space<vmem>>, vector<8x256xf32>
    tpu.vector_store %arg8[%c56_99, %c256_100], %177 {strides = array<i32>} : memref<72x512xf32, #tpu.memory_space<vmem>>, vector<8x256xf32>,
    %c0_101 = arith.constant 0 : index
    %c145_102 = arith.constant 145 : index
    %179 = vector.load %arg7[%c0_101, %c145_102] : memref<8x512xf32, #tpu.memory_space<vmem>>, vector<8x256xf32>
    %cst_103 = arith.constant 0.000000e+00 : f32
    %180 = vector.shape_cast %26 : vector<1x256xi1> to vector<1x256xi1>
    %181 = vector.broadcast %180 : vector<1x256xi1> to vector<8x256xi1>
    %182 = vector.broadcast %cst_103 : f32 to vector<8x256xf32>
    %183 = arith.select %181, %179, %182 : vector<8x256xi1>, vector<8x256xf32>
    %c64_104 = arith.constant 64 : index
    %c256_105 = arith.constant 256 : index
    %184 = vector.load %arg8[%c64_104, %c256_105] : memref<72x512xf32, #tpu.memory_space<vmem>>, vector<8x256xf32>
    tpu.vector_store %arg8[%c64_104, %c256_105], %183 {strides = array<i32>} : memref<72x512xf32, #tpu.memory_space<vmem>>, vector<8x256xf32>,
    %c0_106 = arith.constant 0 : index
    %c0_107 = arith.constant 0 : index
    %185 = vector.load %arg4[%c0_106, %c0_107] : memref<16x72xf32, #tpu.memory_space<vmem>>, vector<16x72xf32>
    %c0_108 = arith.constant 0 : index
    %c0_109 = arith.constant 0 : index
    %186 = vector.load %arg8[%c0_108, %c0_109] : memref<72x512xf32, #tpu.memory_space<vmem>>, vector<72x512xf32>
    %cst_110 = arith.constant dense<0.000000e+00> : vector<16x512xf32>
    %187 = tpu.matmul %185, %186, %cst_110 {dimension_numbers = #tpu.dot_dimension_numbers<[1], [0], [0], [1], [0, 0, 1, 1], [], []>} : vector<16x72xf32>, vector<72x512xf32>, vector<16x512xf32> -> vector<16x512xf32>
    %c0_111 = arith.constant 0 : index
    %c0_112 = arith.constant 0 : index
    %188 = vector.load %arg5[%c0_111, %c0_112] : memref<16x1xf32, #tpu.memory_space<vmem>>, vector<16x1xf32>
    %189 = vector.broadcast %188 : vector<16x1xf32> to vector<16x512xf32>
    %190 = arith.addf %187, %189 : vector<16x512xf32>
    %191 = vector.extract_strided_slice %190 {offsets = [0, 0], sizes = [16, 256], strides = [1, 1]} : vector<16x512xf32> to vector<16x256xf32>
    %c0_113 = arith.constant 0 : index
    %c0_114 = arith.constant 0 : index
    %c0_115 = arith.constant 0 : index
    %192 = vector.load %arg6[%c0_113, %c0_114, %c0_115] : memref<2x16x256xf32, #tpu.memory_space<vmem>>, vector<1x16x256xf32>
    %193 = vector.shape_cast %192 : vector<1x16x256xf32> to vector<16x256xf32>
    %194 = vector.shape_cast %191 : vector<16x256xf32> to vector<1x16x256xf32>
    tpu.vector_store %arg6[%c0_113, %c0_114, %c0_115], %194 {strides = array<i32>} : memref<2x16x256xf32, #tpu.memory_space<vmem>>, vector<1x16x256xf32>,
    %195 = vector.extract_strided_slice %190 {offsets = [0, 256], sizes = [16, 256], strides = [1, 1]} : vector<16x512xf32> to vector<16x256xf32>
    %c1_116 = arith.constant 1 : index
    %c0_117 = arith.constant 0 : index
    %c0_118 = arith.constant 0 : index
    %196 = vector.load %arg6[%c1_116, %c0_117, %c0_118] : memref<2x16x256xf32, #tpu.memory_space<vmem>>, vector<1x16x256xf32>
    %197 = vector.shape_cast %196 : vector<1x16x256xf32> to vector<16x256xf32>
    %198 = vector.shape_cast %195 : vector<16x256xf32> to vector<1x16x256xf32>
    tpu.vector_store %arg6[%c1_116, %c0_117, %c0_118], %198 {strides = array<i32>} : memref<2x16x256xf32, #tpu.memory_space<vmem>>, vector<1x16x256xf32>,
    return
  }
  func.func @transform_0(%arg0: i32) -> (i32, i32, i32) {
    %c0_i32 = arith.constant 0 : i32
    %c0_i32_0 = arith.constant 0 : i32
    %c0_i32_1 = arith.constant 0 : i32
    return %arg0, %c0_i32, %c0_i32_0 : i32, i32, i32
  }
  func.func @transform_1(%arg0: i32) -> (i32, i32) {
    %c0_i32 = arith.constant 0 : i32
    %c0_i32_0 = arith.constant 0 : i32
    %c0_i32_1 = arith.constant 0 : i32
    return %c0_i32, %c0_i32_0 : i32, i32
  }
  func.func @transform_2(%arg0: i32) -> (i32, i32) {
    %c0_i32 = arith.constant 0 : i32
    %c0_i32_0 = arith.constant 0 : i32
    %c0_i32_1 = arith.constant 0 : i32
    return %c0_i32, %c0_i32_0 : i32, i32
  }
  func.func @transform_3(%arg0: i32) -> (i32, i32) {
    %c0_i32 = arith.constant 0 : i32
    %c0_i32_0 = arith.constant 0 : i32
    %c0_i32_1 = arith.constant 0 : i32
    return %c0_i32, %c0_i32_0 : i32, i32
  }
  func.func @transform_4(%arg0: i32) -> (i32, i32) {
    %c0_i32 = arith.constant 0 : i32
    %c0_i32_0 = arith.constant 0 : i32
    %c0_i32_1 = arith.constant 0 : i32
    return %c0_i32, %c0_i32_0 : i32, i32
  }
  func.func @transform_5(%arg0: i32) -> (i32, i32, i32) {
    %c0_i32 = arith.constant 0 : i32
    %c0_i32_0 = arith.constant 0 : i32
    %c0_i32_1 = arith.constant 0 : i32
    return %arg0, %c0_i32, %c0_i32_0 : i32, i32, i32
  }
}

</mosaic_0001>

<bundles_post_ra>
// kernel: tpu_custom_call.1
= control target key start
LH: loop header
LB: loop body
LE: loop exit
PB: predicated region body
PF: predicated region fallthrough
CT: control target
= control target key end

     0   :  { %10 = vsyncpa [#allocation5], 0  ;;  %s1325_s0 = inlined_call_operand.vmem [shape: f32[2,8,256], index: 0, kind: input, shape index: {}]   ;;  %s1326_s1 = inlined_call_operand.vmem [shape: f32[8,1], index: 1, kind: input, shape index: {}]   ;;  %s1327_s2 = inlined_call_operand.vmem [shape: f32[8,1], index: 2, kind: input, shape index: {}]   ;;  %s1328_s3 = inlined_call_operand.hbm [shape: f32[16,72], index: 3, kind: input, shape index: {}]   ;;  %s1329_s4 = inlined_call_operand.vmem [shape: f32[16,1], index: 4, kind: input, shape index: {}]   ;;  %s1330_s5 = inlined_call_operand.hbm [shape: f32[2,16,256], index: 5, kind: output, shape index: {}]  }
   0x1   :  { %11 = vsyncpa [#allocation6], 0  ;;  %s1023_s18 = smov [#allocation4]   ;;  %s975_s22 = scalar_lea.hbm %s1328_s3, 256 }
   0x2   :  { %s23_s19 = sshll.u32 %s1023_s18, 4  ;;  %p976_p0 = scmp.ne.s32.totalorder %s1328_s3, %s975_s22  ;;  %s24_s19 = int_to_ptr.vmem [resolvable:$true] %s23_s19 }
   0x3   :  { %p979_p1 = scmp.lt.u32.totalorder %s975_s22, %s1328_s3 }
   0x5   :  { %p981_p2 = pnand %p979_p1, %p976_p0 }
   0x7   :  { %984 = shalt.err (!%p981_p2)
}
   0x8   :  { %s985_s27 = scalar_lea.vmem %s24_s19, 256  ;;  %p990_p4 = scmp.lt.s32.totalorder %s24_s19, %s24_s19 }
   0x9   :  { %p986_p3 = scmp.ne.s32.totalorder %s24_s19, %s985_s27  ;;  %p991_p5 = scmp.lt.s32.totalorder %s985_s27, %s985_s27 }
   0xb   :  { %p992_p6 = por %p991_p5, %p990_p4 }
   0xd   :  { %p993_p7 = pnand %p992_p6, %p986_p3 }
   0xf   :  { %996 = shalt.err (!%p993_p7)
}
  0x10   :  { %s1024_s28 = smov 128   ;;  %s1025_s29 = smov 8  }
  0x11   :  { %29 = dma.hbm_to_vmem [thread:$0]  %s1328_s3, 256, %s24_s19, [#allocation5], %s1024_s28, %s1024_s28, %s1025_s29  }
  0x12   :  { %1019 = dma.done.wait [#allocation5], 256  }
  0x13   :  { %1020 = vsyncadd [#allocation5], 4294967040  ;;  %v1084_v0 = vld [vmem:[%s1325_s0] sm:$0xff]  ;;  %v1089_v1 = vld [vmem:[%s1325_s0 + $0x8] sm:$0xff]  ;;  %v1026_v12 = vmov 0   ;;  %v1027_v39 = vmov 0.0  }
  0x14   :  { %v1094_v2 = vld [vmem:[%s1325_s0 + $0x10] sm:$0xff]  ;;  %v72_v3 = vadd.f32 %v1089_v1, %v1084_v0  ;;  %v75_v4 = vmul.f32 %v1084_v0, %v1084_v0  ;;  %v76_v5 = vmul.f32 %v1089_v1, %v1089_v1  ;;  %v1105_v6 = vld [vmem:[%s1325_s0 + $0x18] sm:$0xff]  ;;  %843 = vset.pattern.permute.xlu0 %v1026_v12  ;;  %844 = vset.pattern.permute.xlu1 %v1026_v12  ;;  %v37_v29 = vld [vmem:[%s1326_s1] sm:$0xff]  ;;  %s1028_s1 = smov 16   ;;  %s1029_s17 = smov 17   ;;  %vm139_vm1 = vcmask 138240  }
  0x15   :  { %v303_v7 = vmul.f32 %v1094_v2, %v1094_v2  ;;  %v304_v8 = vmul.f32 %v1105_v6, %v1105_v6  ;;  %v300_v10 = vadd.f32 %v1105_v6, %v1094_v2  ;;  %v38_v35 = vld [vmem:[%s1327_s2] sm:$0xff]  ;;  %629 = vmatprep.mubr.f32.mxu0 %v1027_v39  ;;  %706 = vmatprep.mubr.f32.mxu1 %v1027_v39  ;;  %s1030_s2 = smov 1   ;;  %s1031_s18 = smov 15   ;;  %vm160_vm2 = vcmask 130048  }
  0x16   :  { %73 = vadd.xlane.f32.xlu0 %v72_v3  ;;  %v77_v9 = vadd.f32 %v76_v5, %v75_v4  ;;  %s1032_s19 = smov 127   ;;  %s1033_s20 = smov 113   ;;  %vm1036_vm4 = vmmov 1   ;;  %vm204_vm7 = vcmask 7168   ;;  %vm183_vm8 = vcmask 121856  }
  0x17   :  { %v305_v11 = vadd.f32 %v304_v8, %v303_v7  ;;  %s1034_s21 = smov 111   ;;  %s1035_s22 = smov 112   ;;  %vm227_vm12 = vcmask 1039360  }
  0x18   :  { %78 = vadd.xlane.f32.xlu1 %v77_v9 }
  0x1a   :  { %301 = vadd.xlane.f32.xlu0 %v300_v10 }
  0x1c   :  { %306 = vadd.xlane.f32.xlu1 %v305_v11 }
  0xa3   :  { %v74_v13 = vpop.xlane.xlu0 %73 }
  0xa4   :  { %v82_v14 = vmul.f32 0.00390625, %v74_v13  ;;  %v547_v13 = vld [vmem:[%s1329_s4 + $0x8] sm:$0xff] }
  0xa5   :  { %v79_v15 = vpop.xlane.xlu1 %78 }
  0xa6   :  { %v85_v16 = vmul.f32 %v82_v14, %v82_v14  ;;  %v84_v17 = vmul.f32 0.00390625, %v79_v15 }
  0xa7   :  { %v302_v18 = vpop.xlane.xlu0 %301 }
  0xa8   :  { %v86_v19 = vsub.f32 %v84_v17, %v85_v16  ;;  %v309_v20 = vmul.f32 0.00390625, %v302_v18  ;;  %v39_v17 = vlaneseq }
  0xa9   :  { %v307_v21 = vpop.xlane.xlu1 %306 }
  0xaa   :  { %v87_v22 = vmax.f32 %v86_v19, 0.0  ;;  %v312_v23 = vmul.f32 %v309_v20, %v309_v20  ;;  %v311_v24 = vmul.f32 0.00390625, %v307_v21  ;;  %v40_v18 = vand.u32 127, %v39_v17 }
  0xac   :  { %v88_v25 = vadd.f32 1e-05, %v87_v22  ;;  %v313_v26 = vsub.f32 %v311_v24, %v312_v23  ;;  %v41_v21 = vadd.s32 128, %v40_v18 }
  0xae   :  { %955 = vrsqrt.f32 %v88_v25  ;;  %v314_v27 = vmax.f32 %v313_v26, 0.0  ;;  %v53_v24 = vand.u32 15, %v41_v21  ;;  %v46_v25 = vand.u32 15, %v40_v18 }
  0xb0   :  { %v315_v28 = vadd.f32 1e-05, %v314_v27  ;;  %vm1176_vm0 = vcmp.ge.s32.totalorder %v53_v24, 1  ;;  %vm1180_vm3 = vcmp.ge.s32.totalorder %v46_v25, 1  ;;  %vm1216_vm9 = vcmp.le.s32.totalorder %v53_v24, 14 }
  0xb1   :  { %vm1189_vm5 = vmpackc.low %vm1036_vm4, %vm1176_vm0  ;;  %vm1221_vm10 = vcmp.le.s32.totalorder %v46_v25, 14 }
  0xb2   :  { %957 = vrsqrt.f32 %v315_v28  ;;  %vm1198_vm6 = vmpackc.low %vm1036_vm4, %vm1180_vm3 }
  0xb3   :  { %vm786_vm11 = vmpackc.low %vm1176_vm0, %vm1216_vm9  ;;  %vm248_vm0 = vcmask 924672  }
  0xb4   :  { %vm789_vm13 = vmpackc.low %vm1180_vm3, %vm1221_vm10  ;;  %vm558_vm3 = vcmask 588800  }
  0xb5   :  { %vm792_vm14 = vmpackc.low %vm1216_vm9, %vm1036_vm4 }
  0xb6   :  { %vm795_vm15 = vmpackc.low %vm1221_vm10, %vm1036_vm4 }
  0xb8   :  { %v956_v30 = vpop.eup %955 }
  0xb9   :  { %v90_v31 = vmul.f32 %v956_v30, %v37_v29 }
  0xbb   :  { %95 = vperm.xlu0 %843, %v90_v31   ;;  %v91_v34 = vmul.f32 %v90_v31, %v82_v14  ;;  %v546_v14 = vld [vmem:[%s1329_s4] sm:$0xff]  ;;  %s1037_s4 = smov [#allocation7]  }
  0xbc   :  { %v958_v32 = vpop.eup %957  ;;  %s733_s27 = sshll.u32 %s1037_s4, 4  ;;  %s734_s27 = int_to_ptr.vmem [resolvable:$true] %s733_s27 }
  0xbd   :  { %v317_v33 = vmul.f32 %v958_v32, %v37_v29  ;;  %v92_v36 = vsub.f32 %v38_v35, %v91_v34  ;;  %s997_s28 = scalar_lea.vmem %s734_s27, 1024  ;;  %p1002_p9 = scmp.lt.s32.totalorder %s734_s27, %s734_s27 }
  0xbe   :  { %p998_p8 = scmp.ne.s32.totalorder %s734_s27, %s997_s28  ;;  %p1003_p10 = scmp.lt.s32.totalorder %s997_s28, %s997_s28 }
  0xbf   :  { %322 = vperm.xlu1 %844, %v317_v33   ;;  %v318_v37 = vmul.f32 %v317_v33, %v309_v20  ;;  %851 = vrot.lane.b32.xlu0 %v1027_v39, %s1028_s1 }
  0xc0   :  { %p1004_p11 = por %p1003_p10, %p1002_p9 }
  0xc1   :  { %v319_v38 = vsub.f32 %v38_v35, %v318_v37 }
  0xc2   :  { %p1005_p12 = pnand %p1004_p11, %p998_p8 }
  0xc3   :  { %102 = vperm.xlu1 %844, %v92_v36   ;;  %861 = vrot.lane.b32.xlu0 %v1027_v39, %s1030_s2 }
  0xc7   :  { %329 = vperm.xlu1 %844, %v319_v38  }
  0xcb   :  { %846 = vrot.lane.b32.xlu1 %v1027_v39, %s1029_s17 }
  0xcf   :  { %856 = vrot.lane.b32.xlu1 %v1027_v39, %s1031_s18 }
 0x13a   :  { %v96_v40 = vpop.permute.xlu0 %95 }
 0x13b   :  { %v98_v42 = vmul.f32 %v96_v40, %v1084_v0  ;;  %v99_v43 = vmul.f32 %v96_v40, %v1089_v1 }
 0x13e   :  { %v323_v41 = vpop.permute.xlu1 %322  ;;  %v852_v15 = vpop.permute.xlu0 %851 }
 0x13f   :  { %v325_v47 = vmul.f32 %v1094_v2, %v323_v41  ;;  %v326_v48 = vmul.f32 %v1105_v6, %v323_v41  ;;  %v853_v26 = vunpack.i.l.bf16 %v852_v15 }
 0x142   :  { %v103_v44 = vpop.permute.xlu1 %102  ;;  %v1170_v19 = vpop.permute.xlu0 %861 }
 0x143   :  { %v105_v45 = vadd.f32 %v103_v44, %v98_v42  ;;  %v106_v46 = vadd.f32 %v103_v44, %v99_v43 }
 0x145   :  { %v745_v49 = vmul.f32 -1.442695, %v105_v45  ;;  %v746_v50 = vmul.f32 -1.442695, %v106_v46 }
 0x146   :  { %v330_v51 = vpop.permute.xlu1 %329 }
 0x147   :  { %959 = vpow2.f32 %v745_v49  ;;  %v332_v52 = vadd.f32 %v330_v51, %v325_v47  ;;  %v333_v53 = vadd.f32 %v330_v51, %v326_v48 }
 0x148   :  { %961 = vpow2.f32 %v746_v50  ;;  %v854_v50 = vunpack.i.h.bf16 %v852_v15 }
 0x149   :  { %v749_v54 = vmul.f32 -1.442695, %v332_v52  ;;  %v750_v55 = vmul.f32 -1.442695, %v333_v53 }
 0x14a   :  { %v847_v16 = vpop.permute.xlu1 %846 }
 0x14b   :  { %963 = vpow2.f32 %v749_v54  ;;  %v848_v32 = vunpack.i.l.bf16 %v847_v16  ;;  %v849_v51 = vunpack.i.h.bf16 %v847_v16  ;;  %v864_v54 = vunpack.i.h.bf16 %v1170_v19 }
 0x14c   :  { %965 = vpow2.f32 %v750_v55  ;;  %v863_v55 = vunpack.i.l.bf16 %v1170_v19 }
 0x14e   :  { %v1172_v20 = vpop.permute.xlu1 %856 }
 0x151   :  { %v960_v56 = vpop.eup %959 }
 0x152   :  { %v962_v57 = vpop.eup %961  ;;  %v113_v58 = vadd.f32 1.0, %v960_v56 }
 0x153   :  { %v114_v59 = vadd.f32 1.0, %v962_v57 }
 0x154   :  { %967 = vrcp.f32 %v113_v58 }
 0x155   :  { %v964_v60 = vpop.eup %963  ;;  %969 = vrcp.f32 %v114_v59 }
 0x156   :  { %v966_v61 = vpop.eup %965  ;;  %v340_v62 = vadd.f32 1.0, %v964_v60 }
 0x157   :  { %v341_v63 = vadd.f32 1.0, %v966_v61 }
 0x158   :  { %971 = vrcp.f32 %v340_v62 }
 0x159   :  { %973 = vrcp.f32 %v341_v63 }
 0x15e   :  { %v968_v0 = vpop.eup %967 }
 0x15f   :  { %v970_v1 = vpop.eup %969  ;;  %v1133_v2 = vmul.f32 %v968_v0, %v105_v45  ;;  %v509_v45 = vld [vmem:[#allocation4 + $0x8] sm:$0xff] }
 0x160   :  { %v1135_v3 = vmul.f32 %v970_v1, %v106_v46 }
 0x162   :  { %v972_v4 = vpop.eup %971  ;;  %v890_v5 = vpack.i.bf16 %v1135_v3, %v1133_v2  ;;  %v920_v11 = vpack.i.bf16 %v1027_v39, %v1135_v3 }
 0x163   :  { %v974_v6 = vpop.eup %973  ;;  %v1139_v7 = vmul.f32 %v972_v4, %v332_v52 }
 0x164   :  { %v1141_v8 = vmul.f32 %v974_v6, %v333_v53  ;;  %891 = vrot.lane.b32.xlu0 %v890_v5, %s1030_s2  ;;  %866 = vrot.lane.b32.xlu1 %v890_v5, %s1029_s17 }
 0x165   :  { %v940_v12 = vpack.i.bf16 %v1139_v7, %v1133_v2 }
 0x166   :  { %v900_v9 = vpack.i.bf16 %v1141_v8, %v1139_v7  ;;  %v910_v10 = vpack.i.bf16 %v1027_v39, %v1141_v8 }
 0x168   :  { %871 = vrot.lane.b32.xlu1 %v890_v5, %s1028_s1  ;;  %901 = vrot.lane.b32.xlu0 %v900_v9, %s1030_s2 }
 0x16c   :  { %911 = vrot.lane.b32.xlu0 %v910_v10, %s1032_s19  ;;  %876 = vrot.lane.b32.xlu1 %v900_v9, %s1029_s17 }
 0x170   :  { %921 = vrot.lane.b32.xlu0 %v920_v11, %s1033_s20  ;;  %881 = vrot.lane.b32.xlu1 %v900_v9, %s1028_s1 }
 0x174   :  { %931 = vrot.lane.b32.xlu0 %v910_v10, %s1033_s20  ;;  %886 = vrot.lane.b32.xlu1 %v890_v5, %s1031_s18  ;;  %v858_v5 = vunpack.i.l.bf16 %v1172_v20 }
 0x178   :  { %941 = vrot.lane.b32.xlu0 %v940_v12, %s1033_s20  ;;  %896 = vrot.lane.b32.xlu1 %v900_v9, %s1031_s18 }
 0x17c   :  { %284 = vrot.lane.b32.xlu0 %v1135_v3, %s1034_s21  ;;  %906 = vrot.lane.b32.xlu1 %v920_v11, %s1032_s19 }
 0x180   :  { %496 = vrot.lane.b32.xlu0 %v1141_v8, %s1034_s21  ;;  %916 = vrot.lane.b32.xlu1 %v940_v12, %s1032_s19 }
 0x184   :  { %494 = vrot.lane.b32.xlu0 %v1139_v7, %s1034_s21  ;;  %926 = vrot.lane.b32.xlu1 %v920_v11, %s1035_s22 }
 0x188   :  { %555 = vperm.xlu0 %843, %v547_v13   ;;  %936 = vrot.lane.b32.xlu1 %v910_v10, %s1035_s22 }
 0x18c   :  { %946 = vrot.lane.b32.xlu1 %v940_v12, %s1035_s22 }
 0x190   :  { %951 = vrot.lane.b32.xlu1 %v1027_v39, %s1034_s21 }
 0x194   :  { %282 = vrot.lane.b32.xlu1 %v1133_v2, %s1034_s21 }
 0x198   :  { %550 = vperm.xlu1 %844, %v546_v14  }
 0x1d6   :  { %v892_v22 = vpop.permute.xlu0 %891  ;;  %v867_v23 = vpop.permute.xlu1 %866 }
 0x1d7   :  { %v869_v27 = vunpack.i.h.bf16 %v867_v23  ;;  %v868_v28 = vunpack.i.l.bf16 %v867_v23  ;;  %v894_v56 = vunpack.i.h.bf16 %v892_v22  ;;  %v893_v57 = vunpack.i.l.bf16 %v892_v22 }
 0x1d8   :  { %v859_v23 = vunpack.i.h.bf16 %v1172_v20 }
 0x1d9   :  { %v141_v36 = vsel %vm139_vm1, %v868_v28, %v869_v27  ;;  %v140_v40 = vsel %vm139_vm1, %v848_v32, %v868_v28  ;;  %v205_v11 = vsel %vm204_vm7, %v863_v55, %v893_v57  ;;  %v206_v12 = vsel %vm204_vm7, %v893_v57, %v894_v56 }
 0x1da   :  { %v1174_v29 = vpop.permute.xlu0 %901  ;;  %v872_v30 = vpop.permute.xlu1 %871 }
 0x1db   :  { %v874_v33 = vunpack.i.h.bf16 %v872_v30  ;;  %v873_v34 = vunpack.i.l.bf16 %v872_v30  ;;  %v904_v13 = vunpack.i.h.bf16 %v1174_v29  ;;  %v903_v14 = vunpack.i.l.bf16 %v1174_v29 }
 0x1dd   :  { %v162_v37 = vsel %vm160_vm2, %v873_v34, %v874_v33  ;;  %v161_v41 = vsel %vm160_vm2, %v853_v26, %v873_v34  ;;  %v420_v26 = vsel %vm204_vm7, %v864_v54, %v903_v14  ;;  %v421_v28 = vsel %vm204_vm7, %v903_v14, %v904_v13 }
 0x1de   :  { %v877_v42 = vpop.permute.xlu1 %876  ;;  %v779_v43 = vpack.c.bf16 %v162_v37, %v141_v36  ;;  %v782_v44 = vpack.c.bf16 %v161_v41, %v140_v40  ;;  %v1202_v46 = vpop.permute.xlu0 %911 }
 0x1df   :  { %v879_v47 = vunpack.i.h.bf16 %v877_v42  ;;  %v878_v48 = vunpack.i.l.bf16 %v877_v42  ;;  %v914_v15 = vunpack.i.h.bf16 %v1202_v46  ;;  %v913_v16 = vunpack.i.l.bf16 %v1202_v46 }
 0x1e0   :  { %781 = vmatprep.subr.msk.bf16.mxu0 %vm1189_vm5, %v779_v43 }
 0x1e1   :  { %784 = vmatpush1.bf16.msk.msra.mxu0 %vm1198_vm6, %v782_v44  ;;  %v363_v58 = vsel %vm139_vm1, %v878_v48, %v879_v47  ;;  %v362_v60 = vsel %vm139_vm1, %v849_v51, %v878_v48  ;;  %v443_v29 = vsel %vm227_vm12, %v913_v16, %v914_v15  ;;  %vm269_vm1 = vcmask 916480  }
 0x1e2   :  { %v882_v49 = vpop.permute.xlu1 %881  ;;  %v1214_v62 = vpop.permute.xlu0 %921  ;;  %v815_v40 = vpack.c.bf16 %v443_v29, %v1141_v8 }
 0x1e3   :  { %v884_v52 = vunpack.i.h.bf16 %v882_v49  ;;  %v883_v53 = vunpack.i.l.bf16 %v882_v49  ;;  %v924_v31 = vunpack.i.h.bf16 %v1214_v62  ;;  %v923_v47 = vunpack.i.l.bf16 %v1214_v62 }
 0x1e5   :  { %v383_v59 = vsel %vm160_vm2, %v883_v53, %v884_v52  ;;  %v382_v61 = vsel %vm160_vm2, %v854_v50, %v883_v53  ;;  %v250_v54 = vsel %vm248_vm0, %v923_v47, %v924_v31  ;;  %vm288_vm2 = vcmask 908288  }
 0x1e6   :  { %v887_v63 = vpop.permute.xlu1 %886  ;;  %v803_v0 = vpack.c.bf16 %v383_v59, %v363_v58  ;;  %v806_v1 = vpack.c.bf16 %v382_v61, %v362_v60  ;;  %v932_v27 = vpop.permute.xlu0 %931 }
 0x1e7   :  { %v889_v6 = vunpack.i.h.bf16 %v887_v63  ;;  %v888_v9 = vunpack.i.l.bf16 %v887_v63  ;;  %v934_v55 = vunpack.i.h.bf16 %v932_v27  ;;  %v933_v56 = vunpack.i.l.bf16 %v932_v27 }
 0x1e8   :  { %805 = vmatprep.subr.msk.bf16.mxu1 %vm1189_vm5, %v803_v0 }
 0x1e9   :  { %v184_v17 = vsel %vm183_vm8, %v858_v5, %v888_v9  ;;  %v185_v18 = vsel %vm183_vm8, %v888_v9, %v889_v6  ;;  %808 = vmatpush1.bf16.msk.msra.mxu1 %vm1198_vm6, %v806_v1 }
 0x1ea   :  { %v785_v19 = vpack.c.bf16 %v206_v12, %v185_v18  ;;  %v788_v21 = vpack.c.bf16 %v205_v11, %v184_v17  ;;  %v897_v22 = vpop.permute.xlu1 %896  ;;  %v942_v42 = vpop.permute.xlu0 %941 }
 0x1eb   :  { %v899_v24 = vunpack.i.h.bf16 %v897_v22  ;;  %v898_v25 = vunpack.i.l.bf16 %v897_v22  ;;  %v943_v62 = vunpack.i.l.bf16 %v942_v42 }
 0x1ec   :  { %787 = vmatprep.subr.msk.bf16.mxu0 %vm786_vm11, %v785_v19 }
 0x1ed   :  { %v400_v30 = vsel %vm183_vm8, %v859_v23, %v898_v25  ;;  %v401_v32 = vsel %vm183_vm8, %v898_v25, %v899_v24  ;;  %790 = vmatpush1.bf16.msk.msra.mxu0 %vm789_vm13, %v788_v21  ;;  %v249_v11 = vsel %vm248_vm0, %v943_v62, %v923_v47  ;;  %v508_v24 = vld [vmem:[#allocation4] sm:$0xff] }
 0x1ee   :  { %v809_v20 = vpack.c.bf16 %v421_v28, %v401_v32  ;;  %v812_v33 = vpack.c.bf16 %v420_v26, %v400_v30  ;;  %v907_v34 = vpop.permute.xlu1 %906  ;;  %v285_v53 = vpop.permute.xlu0 %284 }
 0x1ef   :  { %v909_v36 = vunpack.i.h.bf16 %v907_v34  ;;  %v908_v37 = vunpack.i.l.bf16 %v907_v34 }
 0x1f0   :  { %811 = vmatprep.subr.msk.bf16.mxu1 %vm786_vm11, %v809_v20 }
 0x1f1   :  { %v229_v41 = vsel %vm227_vm12, %v908_v37, %v909_v36  ;;  %814 = vmatpush1.bf16.msk.msra.mxu1 %vm789_vm13, %v812_v33 }
 0x1f2   :  { %v791_v43 = vpack.c.bf16 %v229_v41, %v1135_v3  ;;  %v917_v44 = vpop.permute.xlu1 %916  ;;  %817 = vmatprep.subr.msk.bf16.mxu1 %vm792_vm14, %v815_v40  ;;  %v497_v0 = vpop.permute.xlu0 %496 }
 0x1f3   :  { %v919_v8 = vunpack.i.h.bf16 %v917_v44  ;;  %v918_v46 = vunpack.i.l.bf16 %v917_v44 }
 0x1f4   :  { %793 = vmatprep.subr.msk.bf16.mxu0 %vm792_vm14, %v791_v43 }
 0x1f5   :  { %v442_v48 = vsel %vm227_vm12, %v919_v8, %v913_v16  ;;  %v228_v35 = vsel %vm227_vm12, %v918_v46, %v908_v37 }
 0x1f6   :  { %v818_v3 = vpack.c.bf16 %v442_v48, %v1139_v7  ;;  %v794_v49 = vpack.c.bf16 %v228_v35, %v1133_v2  ;;  %v927_v50 = vpop.permute.xlu1 %926  ;;  %v463_v2 = vsel %vm248_vm0, %v933_v56, %v934_v55  ;;  %v944_v7 = vunpack.i.h.bf16 %v942_v42  ;;  %v495_v21 = vpop.permute.xlu0 %494 }
 0x1f7   :  { %v929_v51 = vunpack.i.h.bf16 %v927_v50  ;;  %v928_v52 = vunpack.i.l.bf16 %v927_v50  ;;  %v500_v25 = vsel %vm288_vm2, %v495_v21, %v497_v0 }
 0x1f8   :  { %796 = vmatpush1.bf16.msk.msra.mxu0 %vm795_vm15, %v794_v49  ;;  %820 = vmatpush1.bf16.msk.msra.mxu1 %vm795_vm15, %v818_v3  ;;  %v462_v12 = vsel %vm248_vm0, %v944_v7, %v933_v56 }
 0x1f9   :  { %v271_v57 = vsel %vm269_vm1, %v928_v52, %v929_v51 }
 0x1fa   :  { %v797_v58 = vpack.c.bf16 %v271_v57, %v250_v54  ;;  %v937_v59 = vpop.permute.xlu1 %936 }
 0x1fb   :  { %v939_v60 = vunpack.i.h.bf16 %v937_v59  ;;  %v938_v61 = vunpack.i.l.bf16 %v937_v59 }
 0x1fc   :  { %799 = vmatprep.subr.msk.bf16.mxu0 %vm1189_vm5, %v797_v58 }
 0x1fd   :  { %v483_v63 = vsel %vm269_vm1, %v938_v61, %v939_v60 }
 0x1fe   :  { %v821_v1 = vpack.c.bf16 %v483_v63, %v463_v2  ;;  %v947_v5 = vpop.permute.xlu1 %946 }
 0x1ff   :  { %v949_v6 = vunpack.i.h.bf16 %v947_v5  ;;  %v948_v9 = vunpack.i.l.bf16 %v947_v5 }
 0x200   :  { %823 = vmatprep.subr.msk.bf16.mxu1 %vm1189_vm5, %v821_v1 }
 0x201   :  { %v270_v13 = vsel %vm269_vm1, %v948_v9, %v928_v52  ;;  %v482_v14 = vsel %vm269_vm1, %v949_v6, %v938_v61 }
 0x202   :  { %v800_v15 = vpack.c.bf16 %v270_v13, %v249_v11  ;;  %v824_v16 = vpack.c.bf16 %v482_v14, %v462_v12  ;;  %v952_v17 = vpop.permute.xlu1 %951 }
 0x203   :  { %v954_v18 = vunpack.i.h.bf16 %v952_v17  ;;  %v953_v19 = vunpack.i.l.bf16 %v952_v17 }
 0x204   :  { %802 = vmatpush1.bf16.msk.msra.mxu0 %vm1198_vm6, %v800_v15  ;;  %826 = vmatpush1.bf16.msk.msra.mxu1 %vm1198_vm6, %v824_v16 }
 0x205   :  { %v290_v38 = vsel %vm288_vm2, %v285_v53, %v953_v19  ;;  %v501_v22 = vsel %vm288_vm2, %v497_v0, %v954_v18 }
 0x206   :  { %v283_v23 = vpop.permute.xlu1 %282  ;;  %765 = vmatprep.subr.msk.mxu0 %vm1216_vm9, %v290_v38  ;;  %777 = vmatprep.subr.msk.mxu1 %vm1216_vm9, %v501_v22 }
 0x207   :  { %v289_v26 = vsel %vm288_vm2, %v283_v23, %v285_v53  ;;  %v556_v10 = vpop.permute.xlu0 %555 }
 0x208   :  { %766 = vmatpush1.msk.msra.mxu0 %vm1221_vm10, %v289_v26  ;;  %778 = vmatpush1.msk.msra.mxu1 %vm1221_vm10, %v500_v25 }
 0x209   :  { %751 = vmatmul.mubr.msk.f32.vlgmr.msra.gmra.mrb[0].mxu0 %vm558_vm3, %v508_v24  ;;  %753 = vmatmul.mubr.msk.f32.vlgmr.msra.gmra.mrb[0].mxu1 %vm558_vm3, %v508_v24 }
 0x20a   :  { %635 = vmatprep.mubr.f32.mxu0 %v1027_v39  ;;  %712 = vmatprep.mubr.f32.mxu1 %v1027_v39 }
 0x20d   :  { %752 = vmatmul.mubr.msk.f32.gmra.mrb[2].mxu0 %vm558_vm3, %v509_v45  ;;  %754 = vmatmul.mubr.msk.f32.gmra.mrb[2].mxu1 %vm558_vm3, %v509_v45 }
 0x217   :  { %v551_v4 = vpop.permute.xlu1 %550 }
 0x2dc   :  { %v631_v27 = vpop.f32.mrb[0].mxu0  ;;  %v708_v28 = vpop.f32.mrb[0].mxu1 }
 0x2dd   :  { %v632_v29 = vadd.f32 %v631_v27, %v551_v4  ;;  %v709_v30 = vadd.f32 %v708_v28, %v551_v4  ;;  %v633_v32 = vpop.f32.mrb[1].mxu0  ;;  %v710_v20 = vpop.f32.mrb[1].mxu1 }
 0x2de   :  { %v634_v33 = vadd.f32 %v633_v32, %v551_v4  ;;  %v711_v34 = vadd.f32 %v710_v20, %v551_v4 }
 0x2df   :  { %719 = vst [vmem:[#allocation7] sm:$0xff] %v632_v29  ;;  %724 = vst [vmem:[#allocation7 + $0x20] sm:$0xff] %v709_v30 }
 0x2e0   :  { %720 = vst [vmem:[#allocation7 + $0x8] sm:$0xff] %v634_v33  ;;  %725 = vst [vmem:[#allocation7 + $0x28] sm:$0xff] %v711_v34  ;;  %v637_v39 = vpop.f32.mrb[2].mxu0  ;;  %v714_v36 = vpop.f32.mrb[2].mxu1 }
 0x2e1   :  { %v638_v37 = vadd.f32 %v637_v39, %v556_v10  ;;  %v715_v40 = vadd.f32 %v714_v36, %v556_v10  ;;  %v639_v41 = vpop.f32.mrb[3].mxu0  ;;  %v716_v42 = vpop.f32.mrb[3].mxu1 }
 0x2e2   :  { %v640_v43 = vadd.f32 %v639_v41, %v556_v10  ;;  %v717_v44 = vadd.f32 %v716_v42, %v556_v10 }
 0x2e3   :  { %721 = vst [vmem:[#allocation7 + $0x10] sm:$0xff] %v638_v37  ;;  %726 = vst [vmem:[#allocation7 + $0x30] sm:$0xff] %v715_v40 }
 0x2e4   :  { %722 = vst [vmem:[#allocation7 + $0x18] sm:$0xff] %v640_v43  ;;  %727 = vst [vmem:[#allocation7 + $0x38] sm:$0xff] %v717_v44 }
 0x2e5   :  { %1008 = shalt.err (!%p1005_p12)
}
 0x2e6   :  { %s1009_s6 = scalar_lea.hbm %s1330_s5, 1024 }
 0x2e7   :  { %p1010_p13 = scmp.ne.s32.totalorder %s1330_s5, %s1009_s6  ;;  %p1013_p0 = scmp.lt.u32.totalorder %s1009_s6, %s1330_s5 }
 0x2e9   :  { %p1015_p1 = pnand %p1013_p0, %p1010_p13 }
 0x2eb   :  { %1018 = shalt.err (!%p1015_p1)
}
 0x2ec   :  { %s1038_s11 = smov 256  }
 0x2ed   :  { %739 = dma.vmem_to_hbm [thread:$0]  %s734_s27, 1024, %s1330_s5, [#allocation6], %s1038_s11, %s1038_s11, %s1028_s1  }
 0x2ee   :  { %1021 = dma.done.wait [#allocation6], 1024  }
 0x2ef   :  { %1022 = vsyncadd [#allocation6], 4294966272 }
 0x2f0   :  { %743 = vsyncpa [#allocation5], 1 }
 0x2f1   :  { %744 = vsyncpa [#allocation6], 1 }

</bundles_post_ra>
